<compile_context>
chip_gen: v6e
topology: v6e:2x2x1
jax: 0.10.0
libtpu: 0.0.40
codegen_flags: <defaults>
</compile_context>

<pallas_src>
import functools

import jax
import jax.numpy as jnp
from jax import lax
from jax.experimental import pallas as pl
from jax.experimental.pallas import tpu as pltpu


# ----------------------------------------------------------------------------
# Fused per-group kernel (two phases over a (group, row_tiles) grid)
#   phase 1 (every row tile): DimReduction + gated attention score -> scratch
#   phase 2 (last row tile):  group softmax + CAM + MaxMin instance selection
# ----------------------------------------------------------------------------
def _fused_group_kernel(x_ref, w1_ref, wvu_ref, bvu_ref, ww_ref, bw_ref,
                        wc_ref, out_ref, mid_ref, a_ref):
    r = pl.program_id(1)
    nr = pl.num_programs(1)
    rt = x_ref.shape[0]
    D = ww_ref.shape[1]

    # ---- phase 1: DimReduction (bf16 MXU, f32 accum) + gated attention ----
    x = x_ref[...]                                                    # bf16
    mid = jnp.maximum(
        jnp.dot(x, w1_ref[...], preferred_element_type=jnp.float32), 0.0)  # (rt, L) f32
    # Single (rt, L) x (L, 2D) matmul fills the 256-wide MXU; slice halves.
    vu = (jnp.dot(mid.astype(jnp.bfloat16), wvu_ref[...],
                  preferred_element_type=jnp.float32) + bvu_ref[...])      # (rt, 2D) f32
    av = jnp.tanh(vu[:, :D])
    au = jax.nn.sigmoid(vu[:, D:])
    # D->1 projection as VPU mul + lane reduce (a 1-col MXU matmul wastes 255/256).
    a = jnp.sum(av * au * ww_ref[...], axis=-1, keepdims=True) + bw_ref[0, 0]

    row0 = pl.multiple_of(r * rt, 8)
    mid_ref[pl.ds(row0, rt), :] = mid
    a_ref[pl.ds(row0, rt), :] = a

    # ---- phase 2: softmax over the group + CAM softmax + MaxMin distill ----
    @pl.when(r == nr - 1)
    def _():
        gs = mid_ref.shape[0]
        n_cls = wc_ref.shape[0]
        midf = mid_ref[...]                                           # (gs, L) f32
        aa = a_ref[...]                                               # (gs, 1) f32

        m = jnp.max(aa, axis=0, keepdims=True)
        e = jnp.exp(aa - m)
        sm = e / jnp.sum(e, axis=0, keepdims=True)                    # group softmax

        # CAM without materializing attf = mid * sm:  cam_c = sum(mid*wc_c)*sm
        if n_cls == 2:
            # sigmoid(cam1 - cam0) is monotone -> rank by the un-squashed diff.
            wdiff = wc_ref[1:2, :] - wc_ref[0:1, :]
            score = jnp.sum(midf * wdiff, axis=-1, keepdims=True) * sm
        else:
            cams = [jnp.sum(midf * wc_ref[c:c + 1, :], axis=-1, keepdims=True) * sm
                    for c in range(n_cls)]
            row_max = cams[0]
            for c in range(1, n_cls):
                row_max = jnp.maximum(row_max, cams[c])
            denom = jnp.zeros_like(cams[0])
            for cc in cams:
                denom = denom + jnp.exp(cc - row_max)
            score = jnp.exp(cams[-1] - row_max) / denom               # P(last class)

        # argmax / argmin (first occurrence) of the last-class score
        row_ids = lax.broadcasted_iota(jnp.int32, (gs, 1), 0)
        imax = jnp.min(jnp.where(score == jnp.max(score), row_ids, gs))
        imin = jnp.min(jnp.where(score == jnp.min(score), row_ids, gs))

        # Gather the two selected rows via a tiny one-hot MXU matmul.
        lane_ids = lax.broadcasted_iota(jnp.int32, (2, gs), 1)
        which = lax.broadcasted_iota(jnp.int32, (2, gs), 0)
        target = jnp.where(which == 0, imax, imin)
        onehot = (lane_ids == target).astype(jnp.float32)             # (2, gs)
        out_ref[0] = jnp.dot(onehot, midf, preferred_element_type=jnp.float32)


def _vmem_limit_bytes():
    # Generation-aware: ~112 MiB on v5e/v6e (128 MiB physical), 48 MiB on v7x.
    try:
        phys = int(pltpu.get_tpu_info().vmem_capacity_bytes)
    except Exception:
        phys = 64 * 1024 * 1024
    return int(min(max(phys - 16 * 1024 * 1024, 32 * 1024 * 1024),
                   112 * 1024 * 1024))


def fused_group_distill(x, p, group, row_tile=None):
    n, input_dim = x.shape
    L = p["w1_bf16"].shape[1]
    D2 = p["wvu_bf16"].shape[1]
    D = D2 // 2
    C = p["wc"].shape[0]
    assert n % group == 0, "kernel assumes equal-size chunks (N % group == 0)"
    gs = n // group
    if row_tile is None:
        row_tile = gs if gs <= 512 else 512
    assert gs % row_tile == 0, "per-group rows must divide by the row tile"
    assert row_tile % 16 == 0, "row tile must be a multiple of 16 (bf16 sublanes)"
    r_per_group = gs // row_tile

    x_bf16 = x.astype(jnp.bfloat16)   # halve the dominant HBM read

    flops = (2 * n * input_dim * L          # x @ w1
             + 2 * n * L * D2               # mid @ [wv|wu]
             + 2 * n * D                    # gated D->1 matvec
             + 2 * C * n * L                # CAM matvecs
             + 2 * group * 2 * gs * L)      # one-hot row gather
    cost = pl.CostEstimate(
        flops=flops,
        transcendentals=2 * n * D + 2 * n,
        bytes_accessed=(2 * (n * input_dim + input_dim * L + L * D2)  # bf16
                        + 4 * (2 * group * L + D2 + D + 1 + C * L)))  # f32

    out = pl.pallas_call(
        _fused_group_kernel,
        out_shape=jax.ShapeDtypeStruct((group, 2, L), jnp.float32),
        grid=(group, r_per_group),
        in_specs=[
            # x row tiles: deep pipelining, small VMEM residency
            pl.BlockSpec((row_tile, input_dim),
                         lambda g, r: (g * r_per_group + r, 0)),
            # weights: VMEM-resident via constant index maps
            pl.BlockSpec((input_dim, L), lambda g, r: (0, 0)),   # w1 (bf16)
            pl.BlockSpec((L, D2), lambda g, r: (0, 0)),          # wv|wu (bf16)
            pl.BlockSpec((1, D2), lambda g, r: (0, 0)),          # bv|bu
            pl.BlockSpec((1, D), lambda g, r: (0, 0)),           # ww (native [1, D])
            pl.BlockSpec(memory_space=pltpu.MemorySpace.SMEM),   # bw scalar
            pl.BlockSpec((C, L), lambda g, r: (0, 0)),           # classifier weight
        ],
        out_specs=pl.BlockSpec((1, 2, L), lambda g, r: (g, 0, 0)),
        scratch_shapes=[
            pltpu.VMEM((gs, L), jnp.float32),   # mid, resident per group
            pltpu.VMEM((gs, 1), jnp.float32),   # attention scores
        ],
        compiler_params=pltpu.CompilerParams(
            dimension_semantics=("parallel", "arbitrary"),
            vmem_limit_bytes=_vmem_limit_bytes()),
        cost_estimate=cost,
    )(x_bf16, p["w1_bf16"], p["wvu_bf16"], p["bvu"], p["ww"], p["bw"], p["wc"])
    return out.reshape(2 * group, L)


# ----------------------------------------------------------------------------
# Attention_with_Classifier on the distilled pseudo-bag.
# Only (2*group, L) rows -> plain JAX (a dedicated pallas_call is pure
# launch + HBM-round-trip overhead per the perf review).
# ----------------------------------------------------------------------------
def uclassifier_head(feat, p):
    av = jnp.tanh(feat @ p["wv2"] + p["bv2"])
    au = jax.nn.sigmoid(feat @ p["wu2"] + p["bu2"])
    a = jnp.sum(av * au * p["ww2"], axis=-1) + p["bw2"][0, 0]     # (M,)
    sm = jax.nn.softmax(a)
    afeat = sm[None, :] @ feat                                    # (1, L)
    return afeat @ p["wc2_t"] + p["bc2"]


# ----------------------------------------------------------------------------
# Full DTFD (eval) forward
# ----------------------------------------------------------------------------
def dtfd_forward(x, p, group, row_tile=None):
    x = x.reshape(x.shape[-2], x.shape[-1])        # squeeze leading batch dim
    d_feat = fused_group_distill(x, p, group, row_tile=row_tile)
    return uclassifier_head(d_feat, p)


# ----------------------------------------------------------------------------
# Pure-JAX reference (same math, full CAM softmax path) for correctness
# ----------------------------------------------------------------------------
def dtfd_reference(x, p, group):
    x = x.reshape(x.shape[-2], x.shape[-1]).astype(jnp.bfloat16)
    mid = jnp.maximum(
        jnp.dot(x, p["w1_bf16"], preferred_element_type=jnp.float32), 0.0)
    D = p["ww"].shape[1]
    vu = (jnp.dot(mid.astype(jnp.bfloat16), p["wvu_bf16"],
                  preferred_element_type=jnp.float32) + p["bvu"])
    av = jnp.tanh(vu[:, :D])
    au = jax.nn.sigmoid(vu[:, D:])
    aa = jnp.sum(av * au * p["ww"], axis=-1) + p["bw"][0, 0]
    n = mid.shape[0]
    gs = n // group
    feats = []
    for g in range(group):
        tm = mid[g * gs:(g + 1) * gs]
        ta = aa[g * gs:(g + 1) * gs]
        sm = jax.nn.softmax(ta)
        attf = tm * sm[:, None]
        cam = attf @ p["wc"].T
        psm = jax.nn.softmax(cam, axis=1)
        s = psm[:, -1]
        feats.append(jnp.stack([tm[jnp.argmax(s)], tm[jnp.argmin(s)]], axis=0))
    feat = jnp.concatenate(feats, axis=0)
    return uclassifier_head(feat, p)


# ----------------------------------------------------------------------------
# Deterministic parameter init (xavier_normal weights, zero biases)
# ----------------------------------------------------------------------------
def _xavier(key, out_d, in_d):
    std = (2.0 / (in_d + out_d)) ** 0.5
    return std * jax.random.normal(key, (out_d, in_d), jnp.float32)   # native [out, in]


def make_params(key, input_dim, inner_dim, attn_d, n_classes):
    ks = jax.random.split(key, 9)
    w1 = _xavier(ks[0], inner_dim, input_dim).T            # (in, L)
    wv = _xavier(ks[1], attn_d, inner_dim).T               # (L, D)
    wu = _xavier(ks[2], attn_d, inner_dim).T               # (L, D)
    p = {
        # bf16 MXU operands (f32 accumulation inside the kernel)
        "w1_bf16": w1.astype(jnp.bfloat16),
        "wvu_bf16": jnp.concatenate([wv, wu], axis=1).astype(jnp.bfloat16),
        "bvu": jnp.zeros((1, 2 * attn_d), jnp.float32),
        "ww": _xavier(ks[3], 1, attn_d),                   # native [1, D] (VPU matvec)
        "bw": jnp.zeros((1, 1), jnp.float32),              # SMEM scalar
        # Classifier_1fc (tier-1) — only its weight is used (CAM) in eval path
        "wc": _xavier(ks[4], n_classes, inner_dim),        # native [C, L]
        # UClassifier (tiny; plain JAX head)
        "wv2": _xavier(ks[5], attn_d, inner_dim).T,
        "bv2": jnp.zeros((1, attn_d), jnp.float32),
        "wu2": _xavier(ks[6], attn_d, inner_dim).T,
        "bu2": jnp.zeros((1, attn_d), jnp.float32),
        "ww2": _xavier(ks[7], 1, attn_d),                  # native [1, D]
        "bw2": jnp.zeros((1, 1), jnp.float32),
        "wc2_t": _xavier(ks[8], n_classes, inner_dim).T,   # (L, C)
        "bc2": jnp.zeros((1, n_classes), jnp.float32),
    }
    return p


if __name__ == "__main__":
    INPUT_DIM = 128     # input_dim (small stand-in for 1024)
    INNER_DIM = 128     # inner_dim L (small stand-in for 512)
    ATTN_D = 128        # attention hidden D
    N_CLASSES = 2
    GROUP = 4           # keep even: v7x shards the parallel group axis over 2 TCs
    N = 128             # instances per bag
    ROW_TILE = 16       # per-group row sub-tile (bf16 sublane multiple)

    key = jax.random.PRNGKey(0)
    kx, kp = jax.random.split(key)
    x = jax.random.normal(kx, (1, N, INPUT_DIM), jnp.float32)
    params = make_params(kp, INPUT_DIM, INNER_DIM, ATTN_D, N_CLASSES)

    fwd = jax.jit(functools.partial(dtfd_forward, group=GROUP, row_tile=ROW_TILE))
    logits = fwd(x, params)
    jax.block_until_ready(logits)

    ref = dtfd_reference(x, params, GROUP)
    assert logits.shape == (1, N_CLASSES), logits.shape
    assert jnp.allclose(logits, ref, atol=2e-3, rtol=2e-3), (logits, ref)

    print("KERNEL_OK")
</pallas_src>

<mosaic_0001>
module attributes {stable_mosaic.version = 11 : i64} {
  func.func @_fused_group_kernel(%arg0: i32, %arg1: i32, %arg2: memref<16x128xbf16, #tpu.memory_space<vmem>>, %arg3: memref<128x128xbf16, #tpu.memory_space<vmem>>, %arg4: memref<128x256xbf16, #tpu.memory_space<vmem>>, %arg5: memref<1x256xf32, #tpu.memory_space<vmem>>, %arg6: memref<1x128xf32, #tpu.memory_space<vmem>>, %arg7: memref<1x1xf32, #tpu.memory_space<smem>>, %arg8: memref<2x128xf32, #tpu.memory_space<vmem>>, %arg9: memref<1x2x128xf32, #tpu.memory_space<vmem>>, %arg10: memref<32x128xf32, #tpu.memory_space<vmem>>, %arg11: memref<32x1xf32, #tpu.memory_space<vmem>>) attributes {dimension_semantics = [#tpu.dimension_semantics<parallel>, #tpu.dimension_semantics<arbitrary>], iteration_bounds = array<i64: 4, 2>, scalar_prefetch = 0 : i64, scratch_operands = 2 : i64, tpu.core_type = #tpu.core_type<tc>, window_params = [{transform_indices = @transform_0, window_bounds = array<i64: 16, 128>}, {pipeline_mode = #tpu.pipeline_mode<synchronous>, transform_indices = @transform_1, window_bounds = array<i64: 128, 128>}, {pipeline_mode = #tpu.pipeline_mode<synchronous>, transform_indices = @transform_2, window_bounds = array<i64: 128, 256>}, {pipeline_mode = #tpu.pipeline_mode<synchronous>, transform_indices = @transform_3, window_bounds = array<i64: 1, 256>}, {pipeline_mode = #tpu.pipeline_mode<synchronous>, transform_indices = @transform_4, window_bounds = array<i64: 1, 128>}, {transform_indices = @transform_5, window_bounds = array<i64: 1, 1>}, {pipeline_mode = #tpu.pipeline_mode<synchronous>, transform_indices = @transform_6, window_bounds = array<i64: 2, 128>}, {transform_indices = @transform_7, window_bounds = array<i64: 1, 2, 128>}]} {
    %c0 = arith.constant 0 : index
    %c0_0 = arith.constant 0 : index
    %0 = vector.load %arg2[%c0, %c0_0] : memref<16x128xbf16, #tpu.memory_space<vmem>>, vector<16x128xbf16>
    %c0_1 = arith.constant 0 : index
    %c0_2 = arith.constant 0 : index
    %1 = vector.load %arg3[%c0_1, %c0_2] : memref<128x128xbf16, #tpu.memory_space<vmem>>, vector<128x128xbf16>
    %cst = arith.constant dense<0.000000e+00> : vector<16x128xf32>
    %2 = tpu.matmul %0, %1, %cst {dimension_numbers = #tpu.dot_dimension_numbers<[1], [0], [0], [1], [0, 0, 1, 1], [], []>} : vector<16x128xbf16>, vector<128x128xbf16>, vector<16x128xf32> -> vector<16x128xf32>
    %cst_3 = arith.constant 0.000000e+00 : f32
    %3 = vector.broadcast %cst_3 : f32 to vector<16x128xf32>
    %4 = arith.maximumf %2, %3 : vector<16x128xf32>
    %5 = arith.truncf %4 : vector<16x128xf32> to vector<16x128xbf16>
    %c0_4 = arith.constant 0 : index
    %c0_5 = arith.constant 0 : index
    %6 = vector.load %arg4[%c0_4, %c0_5] : memref<128x256xbf16, #tpu.memory_space<vmem>>, vector<128x256xbf16>
    %cst_6 = arith.constant dense<0.000000e+00> : vector<16x256xf32>
    %7 = tpu.matmul %5, %6, %cst_6 {dimension_numbers = #tpu.dot_dimension_numbers<[1], [0], [0], [1], [0, 0, 1, 1], [], []>} : vector<16x128xbf16>, vector<128x256xbf16>, vector<16x256xf32> -> vector<16x256xf32>
    %c0_7 = arith.constant 0 : index
    %c0_8 = arith.constant 0 : index
    %8 = vector.load %arg5[%c0_7, %c0_8] : memref<1x256xf32, #tpu.memory_space<vmem>>, vector<1x256xf32>
    %9 = vector.broadcast %8 : vector<1x256xf32> to vector<16x256xf32>
    %10 = arith.addf %7, %9 : vector<16x256xf32>
    %11 = vector.extract_strided_slice %10 {offsets = [0, 0], sizes = [16, 128], strides = [1, 1]} : vector<16x256xf32> to vector<16x128xf32>
    %12 = math.tanh %11 : vector<16x128xf32>
    %13 = vector.extract_strided_slice %10 {offsets = [0, 128], sizes = [16, 128], strides = [1, 1]} : vector<16x256xf32> to vector<16x128xf32>
    %14 = arith.negf %13 : vector<16x128xf32>
    %15 = math.exp %14 : vector<16x128xf32>
    %cst_9 = arith.constant 1.000000e+00 : f32
    %16 = vector.broadcast %cst_9 : f32 to vector<16x128xf32>
    %17 = arith.addf %16, %15 : vector<16x128xf32>
    %18 = arith.divf %16, %17 : vector<16x128xf32>
    %19 = arith.mulf %12, %18 : vector<16x128xf32>
    %c0_10 = arith.constant 0 : index
    %c0_11 = arith.constant 0 : index
    %20 = vector.load %arg6[%c0_10, %c0_11] : memref<1x128xf32, #tpu.memory_space<vmem>>, vector<1x128xf32>
    %21 = vector.broadcast %20 : vector<1x128xf32> to vector<16x128xf32>
    %22 = arith.mulf %19, %21 : vector<16x128xf32>
    %cst_12 = arith.constant dense<0.000000e+00> : vector<16xf32>
    %23 = vector.multi_reduction <add>, %22, %cst_12 [1] : vector<16x128xf32> to vector<16xf32>
    %24 = vector.shape_cast %23 : vector<16xf32> to vector<16x1xf32>
    %c0_13 = arith.constant 0 : index
    %c0_14 = arith.constant 0 : index
    %25 = memref.load %arg7[%c0_13, %c0_14] : memref<1x1xf32, #tpu.memory_space<smem>>
    %26 = vector.broadcast %25 : f32 to vector<16x1xf32>
    %27 = arith.addf %24, %26 : vector<16x1xf32>
    %c16_i32 = arith.constant 16 : i32
    %28 = arith.muli %arg1, %c16_i32 : i32
    %29 = tpu.assume_multiple %28, 8 : i32
    %30 = arith.index_cast %29 : i32 to index
    %c0_15 = arith.constant 0 : index
    %31 = vector.load %arg10[%30, %c0_15] : memref<32x128xf32, #tpu.memory_space<vmem>>, vector<16x128xf32>
    tpu.vector_store %arg10[%30, %c0_15], %4 {strides = array<i32>} : memref<32x128xf32, #tpu.memory_space<vmem>>, vector<16x128xf32>,
    %32 = arith.index_cast %29 : i32 to index
    %c0_16 = arith.constant 0 : index
    %33 = vector.load %arg11[%32, %c0_16] : memref<32x1xf32, #tpu.memory_space<vmem>>, vector<16x1xf32>
    tpu.vector_store %arg11[%32, %c0_16], %27 {strides = array<i32>} : memref<32x1xf32, #tpu.memory_space<vmem>>, vector<16x1xf32>,
    %c1_i32 = arith.constant 1 : i32
    %34 = arith.cmpi eq, %arg1, %c1_i32 : i32
    %35 = arith.extui %34 : i1 to i32
    %c0_i32 = arith.constant 0 : i32
    %36 = arith.cmpi ne, %35, %c0_i32 : i32
    scf.if %36 {
      %c0_17 = arith.constant 0 : index
      %c0_18 = arith.constant 0 : index
      %37 = vector.load %arg10[%c0_17, %c0_18] : memref<32x128xf32, #tpu.memory_space<vmem>>, vector<32x128xf32>
      %c0_19 = arith.constant 0 : index
      %c0_20 = arith.constant 0 : index
      %38 = vector.load %arg11[%c0_19, %c0_20] : memref<32x1xf32, #tpu.memory_space<vmem>>, vector<32x1xf32>
      %cst_21 = arith.constant dense<0xFF800000> : vector<1xf32>
      %39 = vector.multi_reduction <maximumf>, %38, %cst_21 [0] : vector<32x1xf32> to vector<1xf32>
      %40 = vector.shape_cast %39 : vector<1xf32> to vector<1x1xf32>
      %41 = vector.broadcast %40 : vector<1x1xf32> to vector<32x1xf32>
      %42 = arith.subf %38, %41 : vector<32x1xf32>
      %43 = math.exp %42 : vector<32x1xf32>
      %cst_22 = arith.constant dense<0.000000e+00> : vector<1xf32>
      %44 = vector.multi_reduction <add>, %43, %cst_22 [0] : vector<32x1xf32> to vector<1xf32>
      %45 = vector.shape_cast %44 : vector<1xf32> to vector<1x1xf32>
      %46 = vector.broadcast %45 : vector<1x1xf32> to vector<32x1xf32>
      %47 = arith.divf %43, %46 : vector<32x1xf32>
      %c1 = arith.constant 1 : index
      %c0_23 = arith.constant 0 : index
      %48 = vector.load %arg8[%c1, %c0_23] : memref<2x128xf32, #tpu.memory_space<vmem>>, vector<1x128xf32>
      %c0_24 = arith.constant 0 : index
      %c0_25 = arith.constant 0 : index
      %49 = vector.load %arg8[%c0_24, %c0_25] : memref<2x128xf32, #tpu.memory_space<vmem>>, vector<1x128xf32>
      %50 = arith.subf %48, %49 : vector<1x128xf32>
      %51 = vector.broadcast %50 : vector<1x128xf32> to vector<32x128xf32>
      %52 = arith.mulf %37, %51 : vector<32x128xf32>
      %cst_26 = arith.constant dense<0.000000e+00> : vector<32xf32>
      %53 = vector.multi_reduction <add>, %52, %cst_26 [1] : vector<32x128xf32> to vector<32xf32>
      %54 = vector.shape_cast %53 : vector<32xf32> to vector<32x1xf32>
      %55 = arith.mulf %54, %47 : vector<32x1xf32>
      %56 = tpu.iota {dimensions = array<i32: 0>} : vector<32x1xi32>
      %57 = vector.shape_cast %55 : vector<32x1xf32> to vector<1x32x1xf32>
      %cst_27 = arith.constant dense<0xFF800000> : vector<1xf32>
      %58 = vector.multi_reduction <maximumf>, %57, %cst_27 [1, 2] : vector<1x32x1xf32> to vector<1xf32>
      %59 = vector.shape_cast %58 : vector<1xf32> to vector<1x1x1xf32>
      %60 = vector.extract %59[0, 0, 0] : f32 from vector<1x1x1xf32>
      %61 = vector.broadcast %60 : f32 to vector<32x1xf32>
      %62 = arith.cmpf oeq, %55, %61 : vector<32x1xf32>
      %c32_i32 = arith.constant 32 : i32
      %63 = vector.broadcast %c32_i32 : i32 to vector<32x1xi32>
      %64 = arith.select %62, %56, %63 : vector<32x1xi1>, vector<32x1xi32>
      %65 = vector.shape_cast %64 : vector<32x1xi32> to vector<1x32x1xi32>
      %cst_28 = arith.constant dense<2147483647> : vector<1xi32>
      %66 = vector.multi_reduction <minsi>, %65, %cst_28 [1, 2] : vector<1x32x1xi32> to vector<1xi32>
      %67 = vector.shape_cast %66 : vector<1xi32> to vector<1x1x1xi32>
      %68 = vector.extract %67[0, 0, 0] : i32 from vector<1x1x1xi32>
      %69 = vector.shape_cast %55 : vector<32x1xf32> to vector<1x32x1xf32>
      %cst_29 = arith.constant dense<0x7F800000> : vector<1xf32>
      %70 = vector.multi_reduction <minimumf>, %69, %cst_29 [1, 2] : vector<1x32x1xf32> to vector<1xf32>
      %71 = vector.shape_cast %70 : vector<1xf32> to vector<1x1x1xf32>
      %72 = vector.extract %71[0, 0, 0] : f32 from vector<1x1x1xf32>
      %73 = vector.broadcast %72 : f32 to vector<32x1xf32>
      %74 = arith.cmpf oeq, %55, %73 : vector<32x1xf32>
      %c32_i32_30 = arith.constant 32 : i32
      %75 = vector.broadcast %c32_i32_30 : i32 to vector<32x1xi32>
      %76 = arith.select %74, %56, %75 : vector<32x1xi1>, vector<32x1xi32>
      %77 = vector.shape_cast %76 : vector<32x1xi32> to vector<1x32x1xi32>
      %cst_31 = arith.constant dense<2147483647> : vector<1xi32>
      %78 = vector.multi_reduction <minsi>, %77, %cst_31 [1, 2] : vector<1x32x1xi32> to vector<1xi32>
      %79 = vector.shape_cast %78 : vector<1xi32> to vector<1x1x1xi32>
      %80 = vector.extract %79[0, 0, 0] : i32 from vector<1x1x1xi32>
      %81 = tpu.iota {dimensions = array<i32: 1>} : vector<2x32xi32>
      %82 = tpu.iota {dimensions = array<i32: 0>} : vector<2x32xi32>
      %c0_i32_32 = arith.constant 0 : i32
      %83 = vector.broadcast %c0_i32_32 : i32 to vector<2x32xi32>
      %84 = arith.cmpi eq, %82, %83 : vector<2x32xi32>
      %85 = vector.broadcast %68 : i32 to vector<2x32xi32>
      %86 = vector.broadcast %80 : i32 to vector<2x32xi32>
      %87 = arith.select %84, %85, %86 : vector<2x32xi1>, vector<2x32xi32>
      %88 = arith.cmpi eq, %81, %87 : vector<2x32xi32>
      %89 = arith.extui %88 : vector<2x32xi1> to vector<2x32xi32>
      %90 = arith.sitofp %89 : vector<2x32xi32> to vector<2x32xf32>
      %cst_33 = arith.constant dense<0.000000e+00> : vector<2x128xf32>
      %91 = tpu.matmul %90, %37, %cst_33 {dimension_numbers = #tpu.dot_dimension_numbers<[1], [0], [0], [1], [0, 0, 1, 1], [], []>} : vector<2x32xf32>, vector<32x128xf32>, vector<2x128xf32> -> vector<2x128xf32>
      %c0_34 = arith.constant 0 : index
      %c0_35 = arith.constant 0 : index
      %c0_36 = arith.constant 0 : index
      %92 = vector.load %arg9[%c0_34, %c0_35, %c0_36] : memref<1x2x128xf32, #tpu.memory_space<vmem>>, vector<1x2x128xf32>
      %93 = vector.shape_cast %92 : vector<1x2x128xf32> to vector<2x128xf32>
      %94 = vector.shape_cast %91 : vector<2x128xf32> to vector<1x2x128xf32>
      tpu.vector_store %arg9[%c0_34, %c0_35, %c0_36], %94 {strides = array<i32>} : memref<1x2x128xf32, #tpu.memory_space<vmem>>, vector<1x2x128xf32>,
    } else {
    }
    return
  }
  func.func @transform_0(%arg0: i32, %arg1: i32) -> (i32, i32) {
    %c2_i32 = arith.constant 2 : i32
    %0 = arith.muli %arg0, %c2_i32 : i32
    %1 = arith.addi %0, %arg1 : i32
    %c0_i32 = arith.constant 0 : i32
    %c0_i32_0 = arith.constant 0 : i32
    return %1, %c0_i32 : i32, i32
  }
  func.func @transform_1(%arg0: i32, %arg1: i32) -> (i32, i32) {
    %c0_i32 = arith.constant 0 : i32
    %c0_i32_0 = arith.constant 0 : i32
    %c0_i32_1 = arith.constant 0 : i32
    return %c0_i32, %c0_i32_0 : i32, i32
  }
  func.func @transform_2(%arg0: i32, %arg1: i32) -> (i32, i32) {
    %c0_i32 = arith.constant 0 : i32
    %c0_i32_0 = arith.constant 0 : i32
    %c0_i32_1 = arith.constant 0 : i32
    return %c0_i32, %c0_i32_0 : i32, i32
  }
  func.func @transform_3(%arg0: i32, %arg1: i32) -> (i32, i32) {
    %c0_i32 = arith.constant 0 : i32
    %c0_i32_0 = arith.constant 0 : i32
    %c0_i32_1 = arith.constant 0 : i32
    return %c0_i32, %c0_i32_0 : i32, i32
  }
  func.func @transform_4(%arg0: i32, %arg1: i32) -> (i32, i32) {
    %c0_i32 = arith.constant 0 : i32
    %c0_i32_0 = arith.constant 0 : i32
    %c0_i32_1 = arith.constant 0 : i32
    return %c0_i32, %c0_i32_0 : i32, i32
  }
  func.func @transform_5(%arg0: i32, %arg1: i32) -> (i32, i32) {
    %c0_i32 = arith.constant 0 : i32
    %c0_i32_0 = arith.constant 0 : i32
    %c0_i32_1 = arith.constant 0 : i32
    return %c0_i32, %c0_i32_0 : i32, i32
  }
  func.func @transform_6(%arg0: i32, %arg1: i32) -> (i32, i32) {
    %c0_i32 = arith.constant 0 : i32
    %c0_i32_0 = arith.constant 0 : i32
    %c0_i32_1 = arith.constant 0 : i32
    return %c0_i32, %c0_i32_0 : i32, i32
  }
  func.func @transform_7(%arg0: i32, %arg1: i32) -> (i32, i32, i32) {
    %c0_i32 = arith.constant 0 : i32
    %c0_i32_0 = arith.constant 0 : i32
    %c0_i32_1 = arith.constant 0 : i32
    return %arg0, %c0_i32, %c0_i32_0 : i32, i32, i32
  }
}

</mosaic_0001>

<bundles_post_ra>
// kernel: dtfd_forward.1
= control target key start
LH: loop header
LB: loop body
LE: loop exit
PB: predicated region body
PF: predicated region fallthrough
CT: control target
= control target key end

     0   :  { %s1254_s26 = smov 0   ;;  %s1256_s27 = smov 0   ;;  %s1497_s0 = inlined_call_operand.vmem [shape: bf16[128,128], index: 0, kind: input, shape index: {}]   ;;  %s1498_s1 = inlined_call_operand.vmem [shape: bf16[128,128], index: 1, kind: input, shape index: {}]   ;;  %s1499_s2 = inlined_call_operand.vmem [shape: bf16[128,256], index: 2, kind: input, shape index: {}]   ;;  %s1500_s3 = inlined_call_operand.vmem [shape: f32[1,256], index: 3, kind: input, shape index: {}]   ;;  %s1501_s4 = inlined_call_operand.vmem [shape: f32[1,128], index: 4, kind: input, shape index: {}]   ;;  %s1502_s5 = inlined_call_operand.<no memory space> [shape: f32[1,1], index: 5, kind: input, shape index: {}]   ;;  %s1503_s6 = inlined_call_operand.vmem [shape: f32[2,128], index: 6, kind: input, shape index: {}]   ;;  %s1504_s7 = inlined_call_operand.vmem [shape: f32[4,2,128], index: 7, kind: output, shape index: {}]  }
   0x1   :  { %12 = sst [smem:[#allocation4]] %s1502_s5  ;;  %s1258_s28 = smov 0  }
   0x2   :  { %s1260_s29 = smov 0   ;;  %s1262_s30 = smov 0  }
   0x3 LB: > { %s27_s5 = sadd.s32 1, %s1196_s28  ;;  %s30_s8 = sadd.s32 1, %s1200_s29  ;;  %s1204_s30 = sphi %s1262_s30, %s18_s30   ;;  %s1200_s29 = sphi %s1260_s29, %s1508_s29   ;;  %s1196_s28 = sphi %s1258_s28, %s1507_s28   ;;  %s1192_s27 = sphi %s1256_s27, %s1506_s27   ;;  %s1188_s26 = sphi %s1254_s26, %s1505_s26  }
   0x4   : > { %p28_p0 = scmp.ge.s32.totalorder %s27_s5, 2  ;;  %p974_p1 = scmp.ge.s32.totalorder %s1204_s30, 1 }
   0x5   : > { %p259_p2 = scmp.lt.s32.totalorder %s1204_s30, 9 }
   0x6   : > { %s1510_s5 = smov (%p28_p0, %s27_s5), 0  ;;  %s1512_s8 = smov (!%p28_p0, %s30_s8), %s1200_s29 }
   0x7   : > { %p260_p3 = pnand %p974_p1, %p259_p2  ;;  %p32_p4 = scmp.ge.s32.totalorder %s1512_s8, 4 }
   0x8   : > { %p302_p5 = scmp.lt.s32.totalorder (!%p260_p3), %s1192_s27, 3  ;;  %s975_s14 = sshll.u32 (!%p260_p3), %s1192_s27, 1 }
   0x9   : > { %s1514_s8 = smov (%p32_p4, %s1512_s8), 0  ;;  %263 = sbr.rel (%p260_p3) target bundleno = 1896 (0x768), region = 48 }
   0xa   : > { %s293_s16 = sadd.s32 (!%p260_p3), %s1188_s26, %s975_s14  ;;  %s1007_s18 = sshll.u32 (!%p260_p3), %s1188_s26, 4 }
   0xb   : > { %s976_s20 = sshll.u32 (!%p260_p3), %s293_s16, 1  ;;  %s603_s25 = sld [smem:[#allocation4]] (!%p260_p3) }
   0xc   : > { %p295_p6 = scmp.lt.s32.totalorder (!%p260_p3), %s976_s20, 15  ;;  %p1008_p7 = scmp.ne.s32.totalorder (!%p260_p3), %s1188_s26, 1 }
   0xe   : > { %v1206_v0 = vmov 0.0   ;;  %v1111_v1 = vld [vmem:[%s1498_s1 + $0x38] sm:$0xff]   ;;  %s303_s11 = scalar_select %p302_p5, %s1192_s27, 3  ;;  %vm1207_vm0 = vmmov 0   ;;  %v1112_v2 = vld [vmem:[%s1498_s1 + $0x30] sm:$0xff]   ;;  %v1113_v3 = vld [vmem:[%s1498_s1 + $0x28] sm:$0xff]   ;;  %v441_v34 = vlaneseq }
   0xf   : > { %1027 = vmatprep.subr.bf16.mxu0 %v1206_v0  ;;  %1043 = vmatprep.mubr.msk.bf16.mxu0 %vm1207_vm0, %v1206_v0  ;;  %s1516_s20 = smov (!%p295_p6, %s976_s20), 15  ;;  %v1120_v4 = vld [vmem:[%s1499_s2 + $0x74] ss:$8 sps:$4 sm:$0xff]   ;;  %v1122_v5 = vld [vmem:[%s1499_s2 + $0x70] ss:$8 sps:$4 sm:$0xff]   ;;  %v1114_v7 = vld [vmem:[%s1498_s1 + $0x20] sm:$0xff]  }
  0x10   : > { %1028 = vmatpush3.bf16.msra.mxu0 %v1111_v1  ;;  %s978_s15 = sshll.u32 %s303_s11, 1  ;;  %s977_s9 = sshll.u32 %s1516_s20, 2  ;;  %v1123_v6 = vld [vmem:[%s1499_s2 + $0x64] ss:$8 sps:$4 sm:$0xff]   ;;  %531 = vmatprep.subr.bf16.mxu1 %v1120_v4  ;;  %v1125_v8 = vld [vmem:[%s1499_s2 + $0x60] ss:$8 sps:$4 sm:$0xff]  }
  0x11   : > { %1029 = vmatprep.subr.bf16.mxu0 %v1206_v0  ;;  %s1296_s19 = scalar_lea.vmem %s1504_s7, %s978_s15  ;;  %s1316_s16 = scalar_lea.vmem %s1497_s0, %s977_s9  ;;  %532 = vmatpush1.bf16.msra.mxu1 %v1122_v5  ;;  %v1126_v9 = vld [vmem:[%s1499_s2 + $0x54] ss:$8 sps:$4 sm:$0xff]   ;;  %v1128_v11 = vld [vmem:[%s1499_s2 + $0x50] ss:$8 sps:$4 sm:$0xff]   ;;  %v1129_v12 = vld [vmem:[%s1499_s2 + $0x44] ss:$8 sps:$4 sm:$0xff]  }
  0x12   : > { %533 = vmatprep.subr.bf16.mxu1 %v1123_v6  ;;  %v1115_v10 = vld [vmem:[%s1498_s1 + $0x18] sm:$0xff]   ;;  %v1116_v13 = vld [vmem:[%s1498_s1 + $0x10] sm:$0xff]   ;;  %v1131_v14 = vld [vmem:[%s1499_s2 + $0x40] ss:$8 sps:$4 sm:$0xff]   ;;  %v1208_v26 = vmov 0   ;;  %s608_s20 = scalar_lea.vmem [#allocation2], %s1007_s18 }
  0x13   : > { %v1132_v15 = vld [vmem:[%s1499_s2 + $0x34] ss:$8 sps:$4 sm:$0xff]   ;;  %v1117_v16 = vld [vmem:[%s1498_s1 + $0x8] sm:$0xff]   ;;  %v1134_v17 = vld [vmem:[%s1499_s2 + $0x30] ss:$8 sps:$4 sm:$0xff]   ;;  %563 = vmatprep.mubr.bf16.mxu1 %v1208_v26  ;;  %v1374_v35 = vshrl.u32 %v441_v34, 7 }
  0x14   : > { %1030 = vmatpush3.bf16.msra.mxu0 %v1112_v2  ;;  %v1135_v18 = vld [vmem:[%s1499_s2 + $0x24] ss:$8 sps:$4 sm:$0xff]   ;;  %v1137_v20 = vld [vmem:[%s1499_s2 + $0x20] ss:$8 sps:$4 sm:$0xff]   ;;  %v1138_v22 = vld [vmem:[%s1499_s2 + $0x14] ss:$8 sps:$4 sm:$0xff]  }
  0x15   : > { %1031 = vmatprep.subr.bf16.mxu0 %v1206_v0  ;;  %534 = vmatpush1.bf16.msra.mxu1 %v1125_v8  ;;  %v1118_v19 = vld [vmem:[%s1498_s1] sm:$0xff]   ;;  %v1140_v23 = vld [vmem:[%s1499_s2 + $0x10] ss:$8 sps:$4 sm:$0xff]   ;;  %v447_v36 = vsub.s32 1, %v1374_v35  ;;  %v443_v47 = vsub.s32 0, %v1374_v35  ;;  %vm612_vm1 = vcmask 7168  }
  0x16   : > { %535 = vmatprep.subr.bf16.mxu1 %v1126_v9  ;;  %v1119_v21 = vld [vmem:[%s1316_s16] sm:$0xff]   ;;  %s611_s27 = scalar_lea.vmem [#allocation3], %s1007_s18 }
  0x17   : > { %v1141_v24 = vld [vmem:[%s1499_s2 + $0x4] ss:$8 sps:$4 sm:$0xff]   ;;  %v1143_v25 = vld [vmem:[%s1499_s2] ss:$8 sps:$4 sm:$0xff]  }
  0x18   : > { %1032 = vmatpush3.bf16.msra.mxu0 %v1113_v3  ;;  %v439_v37 = vld [vmem:[%s1500_s3] sm:$0x3] }
  0x19   : > { %1033 = vmatprep.subr.bf16.mxu0 %v1206_v0  ;;  %536 = vmatpush1.bf16.msra.mxu1 %v1128_v11  ;;  %v448_v38 = vrot.slane %v439_v37, %v447_v36  ;;  %v444_v48 = vrot.slane %v439_v37, %v443_v47  ;;  %v1006_v57 = vld [vmem:[%s1501_s4] ss:$0 sm:$0xff] }
  0x1a   : > { %537 = vmatprep.subr.bf16.mxu1 %v1129_v12 }
  0x1c   : > { %1034 = vmatpush3.bf16.msra.mxu0 %v1114_v7 }
  0x1d   : > { %1035 = vmatprep.subr.bf16.mxu0 %v1206_v0  ;;  %538 = vmatpush1.bf16.msra.mxu1 %v1131_v14 }
  0x1e   : > { %539 = vmatprep.subr.bf16.mxu1 %v1132_v15 }
  0x20   : > { %1036 = vmatpush3.bf16.msra.mxu0 %v1115_v10 }
  0x21   : > { %1037 = vmatprep.subr.bf16.mxu0 %v1206_v0  ;;  %540 = vmatpush1.bf16.msra.mxu1 %v1134_v17 }
  0x22   : > { %541 = vmatprep.subr.bf16.mxu1 %v1135_v18 }
  0x24   : > { %1038 = vmatpush3.bf16.msra.mxu0 %v1116_v13 }
  0x25   : > { %1039 = vmatprep.subr.bf16.mxu0 %v1206_v0  ;;  %542 = vmatpush1.bf16.msra.mxu1 %v1137_v20 }
  0x26   : > { %543 = vmatprep.subr.bf16.mxu1 %v1138_v22 }
  0x28   : > { %1040 = vmatpush3.bf16.msra.mxu0 %v1117_v16 }
  0x29   : > { %1041 = vmatprep.subr.bf16.mxu0 %v1206_v0  ;;  %544 = vmatpush1.bf16.msra.mxu1 %v1140_v23  ;;  %v604_v0 = vstv %s603_s25 }
  0x2a   : > { %545 = vmatprep.subr.bf16.mxu1 %v1141_v24 }
  0x2c   : > { %1042 = vmatpush3.bf16.msra.mxu0 %v1118_v19 }
  0x2d   : > { %546 = vmatpush1.bf16.msra.mxu1 %v1143_v25 }
  0x2f   : > { %1044 = vmatmul.mubr.bf16.vlgmr.msra.gmra.mxu0 %v1119_v21 }
  0xef   : > { %v413_v27 = vpop.f32.mrf.mxu0 }
  0xf0   : > { %v420_v28 = vmax.f32 %v413_v27, 0.0 }
  0xf1   : > { %v1045_v29 = vpop.f32.mrf.mxu0 }
  0xf2   : > { %609 = vst [vmem:[%s608_s20] sm:$0xff] %v420_v28 }
  0xf3   : > { %v416_v30 = vpop.f32.mrf.mxu0 }
  0xf4   : > { %v421_v31 = vmax.f32 %v416_v30, 0.0 }
  0xf5   : > { %v1046_v32 = vpop.f32.mrf.mxu0 }
  0xf6   : > { %v422_v33 = vpack.c.bf16 %v421_v31, %v420_v28  ;;  %610 = vst [vmem:[%s608_s20 + $0x8] sm:$0xff] %v421_v31 }
  0xf8   : > { %564 = vmatmul.mubr.bf16.vlgmr.msra.gmra.mxu1 %v422_v33 }
 0x1b8   : > { %v565_v39 = vpop.f32.mrf.mxu1 }
 0x1b9   : > { %v566_v49 = vadd.f32 %v565_v39, %v444_v48 }
 0x1ba   : > { %v567_v40 = vpop.f32.mrf.mxu1 }
 0x1bb   : > { %v568_v41 = vadd.f32 %v567_v40, %v448_v38 }
 0x1bc   : > { %v569_v42 = vpop.f32.mrf.mxu1 }
 0x1bd   : > { %v1004_v43 = vmul.f32 -1.442695, %v568_v41  ;;  %v570_v52 = vadd.f32 %v569_v42, %v444_v48 }
 0x1be   : > { %v571_v44 = vpop.f32.mrf.mxu1 }
 0x1bf   : > { %1144 = vpow2.f32 %v1004_v43  ;;  %v572_v45 = vadd.f32 %v571_v44, %v448_v38 }
 0x1c1   : > { %v1005_v46 = vmul.f32 -1.442695, %v572_v45 }
 0x1c3   : > { %1146 = vpow2.f32 %v1005_v46 }
 0x1c4   : > { %1148 = vtanh.f32 %v566_v49 }
 0x1cc   : > { %v1145_v50 = vpop.eup %1144 }
 0x1cd   : > { %v582_v51 = vadd.f32 1.0, %v1145_v50 }
 0x1cf   : > { %1150 = vrcp.f32 %v582_v51 }
 0x1d0   : > { %v1147_v53 = vpop.eup %1146  ;;  %1152 = vtanh.f32 %v570_v52 }
 0x1d1   : > { %v583_v54 = vadd.f32 1.0, %v1147_v53  ;;  %v1149_v55 = vpop.eup %1148 }
 0x1d3   : > { %1154 = vrcp.f32 %v583_v54 }
 0x1dc   : > { %v1151_v56 = vpop.eup %1150 }
 0x1dd   : > { %v588_v58 = vmul.f32 %v1151_v56, %v1149_v55  ;;  %v1153_v59 = vpop.eup %1152 }
 0x1df   : > { %v597_v60 = vmul.f32 %v1006_v57, %v588_v58 }
 0x1e0   : > { %v1155_v61 = vpop.eup %1154 }
 0x1e1   : > { %599 = vadd.xlane.f32.xlu0 %v597_v60  ;;  %v589_v62 = vmul.f32 %v1155_v61, %v1153_v59 }
 0x1e3   : > { %v598_v63 = vmul.f32 %v1006_v57, %v589_v62 }
 0x1e5   : > { %601 = vadd.xlane.f32.xlu0 %v598_v63 }
 0x26a   : > { %v600_v1 = vpop.xlane.xlu0 %599 }
 0x26b   : > { %v605_v2 = vadd.f32 %v604_v0, %v600_v1 }
 0x26d   : > { %613 = vst.msk [vmem:[%s611_s27] sm:$0xff] %vm612_vm1, %v605_v2  ;;  %618 = sbr.rel (%p1008_p7) target bundleno = 1896 (0x768), region = 52 }
 0x26e   : > { %v602_v3 = vpop.xlane.xlu0 %601 }
 0x26f   : > { %v606_v4 = vadd.f32 %v604_v0, %v602_v3 }
 0x271   : > { %614 = vst.msk [vmem:[%s611_s27 + $0x8] sm:$0xff] %vm612_vm1, %v606_v4 }
 0x272   : > { %v670_v5 = vld [vmem:[%s1503_s6 + $0x1] sm:$0x1]  ;;  %v671_v6 = vld [vmem:[%s1503_s6] sm:$0x1]  ;;  %v1395_v8 = vld [vmem:[#allocation2 + $0x10] sm:$0xff] }
 0x273   : > { %v672_v7 = vsub.f32 %v670_v5, %v671_v6  ;;  %v1397_v9 = vld [vmem:[#allocation2] sm:$0xff]  ;;  %v1399_v11 = vld [vmem:[#allocation2 + $0x18] sm:$0xff]  ;;  %v1401_v12 = vld [vmem:[#allocation2 + $0x8] sm:$0xff] }
 0x275   : > { %v676_v10 = vrot.slane %v672_v7, %v443_v47 }
 0x277   : > { %v679_v13 = vmul.f32 %v676_v10, %v1395_v8  ;;  %v677_v14 = vmul.f32 %v676_v10, %v1397_v9  ;;  %v680_v15 = vmul.f32 %v676_v10, %v1399_v11  ;;  %v678_v16 = vmul.f32 %v676_v10, %v1401_v12 }
 0x278   : > { %v623_v17 = vld [vmem:[#allocation3] sm:$0xff]  ;;  %v624_v18 = vld [vmem:[#allocation3 + $0x8] sm:$0xff]  ;;  %v625_v19 = vld [vmem:[#allocation3 + $0x10] sm:$0xff] }
 0x279   : > { %685 = vadd.xlane.f32.xlu1 %v679_v13  ;;  %681 = vadd.xlane.f32.xlu0 %v677_v14  ;;  %v626_v20 = vld [vmem:[#allocation3 + $0x18] sm:$0xff]  ;;  %v627_v21 = vsel %vm612_vm1, %v623_v17, -inf  ;;  %v628_v22 = vsel %vm612_vm1, %v624_v18, -inf  ;;  %v629_v23 = vsel %vm612_vm1, %v625_v19, -inf }
 0x27a   : > { %v630_v24 = vsel %vm612_vm1, %v626_v20, -inf  ;;  %v631_v25 = vmax.f32 %v627_v21, %v628_v22 }
 0x27b   : > { %v632_v26 = vmax.f32 %v629_v23, %v630_v24 }
 0x27d   : > { %687 = vadd.xlane.f32.xlu1 %v680_v15  ;;  %683 = vadd.xlane.f32.xlu0 %v678_v16  ;;  %v633_v27 = vmax.f32 %v631_v25, %v632_v26 }
 0x27f   : > { %v634_v28 = vrot.slane %v633_v27, 4 }
 0x281   : > { %v635_v29 = vmax.f32 %v633_v27, %v634_v28  ;;  %v1432_v28 = vadd.s32 8, %v1374_v35 }
 0x283   : > { %v636_v30 = vrot.slane %v635_v29, 2 }
 0x285   : > { %v637_v31 = vmax.f32 %v635_v29, %v636_v30  ;;  %v1435_v29 = vadd.s32 16, %v1374_v35  ;;  %v1438_v30 = vadd.s32 24, %v1374_v35 }
 0x287   : > { %v638_v32 = vrot.slane %v637_v31, 1 }
 0x289   : > { %v639_v33 = vmax.f32 %v637_v31, %v638_v32 }
 0x28b   : > { %v640_v36 = vsub.f32 %v623_v17, %v639_v33  ;;  %v641_v37 = vsub.f32 %v624_v18, %v639_v33  ;;  %v642_v39 = vsub.f32 %v625_v19, %v639_v33  ;;  %v643_v41 = vsub.f32 %v626_v20, %v639_v33 }
 0x28d   : > { %v644_v38 = vmul.f32 1.442695, %v640_v36  ;;  %v646_v40 = vmul.f32 1.442695, %v641_v37  ;;  %v648_v42 = vmul.f32 1.442695, %v642_v39 }
 0x28e   : > { %v650_v43 = vmul.f32 1.442695, %v643_v41 }
 0x28f   : > { %1156 = vpow2.f32 %v644_v38 }
 0x290   : > { %1158 = vpow2.f32 %v646_v40 }
 0x291   : > { %1160 = vpow2.f32 %v648_v42 }
 0x292   : > { %1162 = vpow2.f32 %v650_v43 }
 0x29c   : > { %v1157_v44 = vpop.eup %1156 }
 0x29d   : > { %v1159_v45 = vpop.eup %1158  ;;  %v652_v46 = vsel %vm612_vm1, %v1157_v44, 0.0 }
 0x29e   : > { %v653_v47 = vsel %vm612_vm1, %v1159_v45, 0.0  ;;  %v1161_v48 = vpop.eup %1160 }
 0x29f   : > { %v654_v49 = vadd.f32 %v653_v47, %v652_v46  ;;  %v655_v50 = vsel %vm612_vm1, %v1161_v48, 0.0  ;;  %v1163_v51 = vpop.eup %1162 }
 0x2a0   : > { %v657_v53 = vsel %vm612_vm1, %v1163_v51, 0.0 }
 0x2a1   : > { %v656_v52 = vadd.f32 %v655_v50, %v654_v49 }
 0x2a3   : > { %v658_v54 = vadd.f32 %v657_v53, %v656_v52 }
 0x2a5   : > { %v659_v55 = vrot.slane %v658_v54, 4 }
 0x2a7   : > { %v660_v56 = vadd.f32 %v659_v55, %v658_v54 }
 0x2a9   : > { %v661_v57 = vrot.slane %v660_v56, 2 }
 0x2ab   : > { %v662_v58 = vadd.f32 %v661_v57, %v660_v56 }
 0x2ad   : > { %v663_v59 = vrot.slane %v662_v58, 1 }
 0x2af   : > { %v664_v60 = vadd.f32 %v663_v59, %v662_v58 }
 0x2b1   : > { %1164 = vrcp.f32 %v664_v60 }
 0x2be   : > { %v1165_v61 = vpop.eup %1164 }
 0x2bf   : > { %v668_v62 = vmul.f32 %v1165_v61, %v1161_v48  ;;  %v666_v63 = vmul.f32 %v1165_v61, %v1157_v44  ;;  %v669_v2 = vmul.f32 %v1165_v61, %v1163_v51  ;;  %v667_v3 = vmul.f32 %v1165_v61, %v1159_v45 }
 0x302   : > { %v686_v0 = vpop.xlane.xlu1 %685  ;;  %v682_v1 = vpop.xlane.xlu0 %681 }
 0x303   : > { %v1415_v4 = vmul.f32 %v686_v0, %v668_v62  ;;  %v1417_v5 = vmul.f32 %v682_v1, %v666_v63 }
 0x305   : > { %v698_v14 = vsel %vm612_vm1, %v1417_v5, -inf  ;;  %v700_v16 = vsel %vm612_vm1, %v1415_v4, -inf  ;;  %v757_v48 = vsel %vm612_vm1, %v1417_v5, inf  ;;  %v759_v49 = vsel %vm612_vm1, %v1415_v4, inf }
 0x306   : > { %v688_v6 = vpop.xlane.xlu1 %687  ;;  %v684_v7 = vpop.xlane.xlu0 %683 }
 0x307   : > { %v1419_v10 = vmul.f32 %v688_v6, %v669_v2  ;;  %v1421_v13 = vmul.f32 %v684_v7, %v667_v3 }
 0x309   : > { %v699_v15 = vsel %vm612_vm1, %v1421_v13, -inf  ;;  %v701_v17 = vsel %vm612_vm1, %v1419_v10, -inf  ;;  %v758_v45 = vsel %vm612_vm1, %v1421_v13, inf  ;;  %v760_v46 = vsel %vm612_vm1, %v1419_v10, inf }
 0x30a   : > { %v702_v18 = vmax.f32 %v698_v14, %v699_v15  ;;  %v703_v19 = vmax.f32 %v700_v16, %v701_v17  ;;  %v761_v51 = vmin.f32 %v757_v48, %v758_v45  ;;  %v762_v52 = vmin.f32 %v759_v49, %v760_v46 }
 0x30c   : > { %v704_v20 = vmax.f32 %v702_v18, %v703_v19  ;;  %v763_v53 = vmin.f32 %v761_v51, %v762_v52 }
 0x30e   : > { %705 = vmax.xlane.f32.xlu0 %v704_v20 }
 0x397   : > { %v706_v21 = vpop.xlane.xlu0 %705 }
 0x398   : > { %v707_v22 = vrot.slane %v706_v21, 4 }
 0x39a   : > { %v708_v23 = vmax.f32 %v706_v21, %v707_v22 }
 0x39c   : > { %v709_v24 = vrot.slane %v708_v23, 2 }
 0x39e   : > { %v710_v25 = vmax.f32 %v708_v23, %v709_v24 }
 0x3a0   : > { %v711_v26 = vrot.slane %v710_v25, 1 }
 0x3a2   : > { %v712_v27 = vmax.f32 %v710_v25, %v711_v26 }
 0x3a4   : > { %1058 = vpush %v712_v27 }
 0x3d5   : > { %s1059_s26 = spop %1058 }
 0x3d6   : > { %v714_v31 = vstv %s1059_s26 }
 0x3d7   : > { %vm715_vm2 = vcmp.eq.f32.partialorder %v1417_v5, %v714_v31  ;;  %vm716_vm3 = vcmp.eq.f32.partialorder %v1421_v13, %v714_v31  ;;  %vm717_vm4 = vcmp.eq.f32.partialorder %v1415_v4, %v714_v31  ;;  %vm718_vm5 = vcmp.eq.f32.partialorder %v1419_v10, %v714_v31 }
 0x3d8   : > { %v719_v32 = vsel %vm715_vm2, %v1374_v35, 32  ;;  %v720_v33 = vsel %vm716_vm3, %v1432_v28, 32  ;;  %v721_v36 = vsel %vm717_vm4, %v1435_v29, 32  ;;  %v722_v37 = vsel %vm718_vm5, %v1438_v30, 32 }
 0x3d9   : > { %v723_v38 = vsel %vm612_vm1, %v719_v32, 2147483647  ;;  %v724_v39 = vsel %vm612_vm1, %v720_v33, 2147483647  ;;  %v725_v40 = vsel %vm612_vm1, %v721_v36, 2147483647 }
 0x3da   : > { %v726_v41 = vsel %vm612_vm1, %v722_v37, 2147483647  ;;  %vm727_vm6 = vcmp.lt.s32.totalorder %v723_v38, %v724_v39  ;;  %v1209_v36 = vmov 0.0  }
 0x3db   : > { %vm729_vm7 = vcmp.lt.s32.totalorder %v725_v40, %v726_v41  ;;  %v728_v42 = vsel %vm727_vm6, %v723_v38, %v724_v39  ;;  %1047 = vmatprep.subr.mxu0 %v1209_v36 }
 0x3dc   : > { %v730_v43 = vsel %vm729_vm7, %v725_v40, %v726_v41  ;;  %1048 = vmatpush3.msra.mxu0 %v1399_v11 }
 0x3dd   : > { %vm731_vm8 = vcmp.lt.s32.totalorder %v728_v42, %v730_v43  ;;  %1049 = vmatprep.subr.mxu0 %v1209_v36 }
 0x3de   : > { %v732_v44 = vsel %vm731_vm8, %v728_v42, %v730_v43  ;;  %1050 = vmatpush3.msra.mxu0 %v1395_v8 }
 0x3df   : > { %v734_v47 = vshra.s32 %v732_v44, 16  ;;  %v733_v54 = vand.u32 65535, %v732_v44  ;;  %1051 = vmatprep.subr.mxu0 %v1209_v36 }
 0x3e0   : > { %1052 = vmatpush3.msra.mxu0 %v1401_v12 }
 0x3e1   : > { %v736_v50 = vcvt.s32.f32 %v734_v47  ;;  %v735_v56 = vcvt.s32.f32 %v733_v54  ;;  %1053 = vmatprep.subr.mxu0 %v1209_v36 }
 0x3e2   : > { %1054 = vmatpush3.msra.mxu0 %v1397_v9  ;;  %v817_v9 = vand.u32 127, %v441_v34 }
 0x3e3   : > { %737 = vmin.xlane.f32.xlu1 %v736_v50 }
 0x3e7   : > { %764 = vmin.xlane.f32.xlu1 %v763_v53 }
 0x46c   : > { %v738_v55 = vpop.xlane.xlu1 %737 }
 0x46d   : > { %vm739_vm9 = vcmp.eq.f32.partialorder %v736_v50, %v738_v55  ;;  %v744_v60 = vcvt.f32.s32 %v738_v55 }
 0x46e   : > { %v740_v57 = vsel %vm739_vm9, %v735_v56, inf  ;;  %vm818_vm9 = vcmp.eq.s32.totalorder %v1374_v35, 0 }
 0x46f   : > { %741 = vmin.xlane.f32.xlu0 %v740_v57  ;;  %v745_v63 = vshll.u32 %v744_v60, 16 }
 0x470   : > { %v765_v58 = vpop.xlane.xlu1 %764 }
 0x471   : > { %v766_v59 = vrot.slane %v765_v58, 4 }
 0x473   : > { %v767_v61 = vmin.f32 %v765_v58, %v766_v59 }
 0x475   : > { %v768_v2 = vrot.slane %v767_v61, 2 }
 0x477   : > { %v769_v7 = vmin.f32 %v767_v61, %v768_v2 }
 0x479   : > { %v770_v16 = vrot.slane %v769_v7, 1 }
 0x47b   : > { %v771_v19 = vmin.f32 %v769_v7, %v770_v16 }
 0x4f8   : > { %v742_v62 = vpop.xlane.xlu0 %741 }
 0x4f9   : > { %v743_v0 = vcvt.f32.s32 %v742_v62 }
 0x4fb   : > { %v746_v1 = vadd.s32 %v745_v63, %v743_v0 }
 0x4fd   : > { %v747_v3 = vrot.slane %v746_v1, 4 }
 0x4ff   : > { %vm748_vm10 = vcmp.lt.s32.totalorder %v746_v1, %v747_v3 }
 0x500   : > { %v749_v6 = vsel %vm748_vm10, %v746_v1, %v747_v3  ;;  %vm825_vm10 = vcmask 261120  }
 0x501   : > { %v750_v14 = vrot.slane %v749_v6, 2 }
 0x503   : > { %vm751_vm11 = vcmp.lt.s32.totalorder %v749_v6, %v750_v14 }
 0x504   : > { %v752_v15 = vsel %vm751_vm11, %v749_v6, %v750_v14 }
 0x505   : > { %v753_v17 = vrot.slane %v752_v15, 1 }
 0x507   : > { %vm754_vm12 = vcmp.lt.s32.totalorder %v752_v15, %v753_v17 }
 0x508   : > { %v755_v18 = vsel %vm754_vm12, %v752_v15, %v753_v17 }
 0x509   : > { %1060 = vpush %v755_v18 }
 0x50a   : > { %1062 = vpush %v771_v19 }
 0x53a   : > { %s1460_s13 = spop %1060 }
 0x53b   : > { %s1063_s14 = spop %1062  ;;  %v819_v45 = vstv %s1460_s13 }
 0x53c   : > { %v773_v20 = vstv %s1063_s14 }
 0x53d   : > { %vm774_vm13 = vcmp.eq.f32.partialorder %v1417_v5, %v773_v20  ;;  %vm775_vm14 = vcmp.eq.f32.partialorder %v1421_v13, %v773_v20  ;;  %vm776_vm15 = vcmp.eq.f32.partialorder %v1415_v4, %v773_v20  ;;  %vm777_vm0 = vcmp.eq.f32.partialorder %v1419_v10, %v773_v20 }
 0x53e   : > { %v778_v21 = vsel %vm774_vm13, %v1374_v35, 32  ;;  %v779_v22 = vsel %vm775_vm14, %v1432_v28, 32  ;;  %v780_v23 = vsel %vm776_vm15, %v1435_v29, 32  ;;  %v781_v24 = vsel %vm777_vm0, %v1438_v30, 32 }
 0x53f   : > { %v782_v25 = vsel %vm612_vm1, %v778_v21, 2147483647  ;;  %v783_v26 = vsel %vm612_vm1, %v779_v22, 2147483647  ;;  %v784_v5 = vsel %vm612_vm1, %v780_v23, 2147483647 }
 0x540   : > { %v785_v13 = vsel %vm612_vm1, %v781_v24, 2147483647  ;;  %vm786_vm2 = vcmp.lt.s32.totalorder %v782_v25, %v783_v26  ;;  %vm1210_vm1 = vmmov 0  }
 0x541   : > { %vm788_vm3 = vcmp.lt.s32.totalorder %v784_v5, %v785_v13  ;;  %v787_v4 = vsel %vm786_vm2, %v782_v25, %v783_v26  ;;  %1055 = vmatprep.mubr.msk.f32.mxu0 %vm1210_vm1, %v1209_v36 }
 0x542   : > { %v789_v10 = vsel %vm788_vm3, %v784_v5, %v785_v13 }
 0x543   : > { %vm790_vm4 = vcmp.lt.s32.totalorder %v787_v4, %v789_v10 }
 0x544   : > { %v791_v27 = vsel %vm790_vm4, %v787_v4, %v789_v10 }
 0x545   : > { %v793_v31 = vshra.s32 %v791_v27, 16  ;;  %v792_v29 = vand.u32 65535, %v791_v27 }
 0x547   : > { %v795_v28 = vcvt.s32.f32 %v793_v31  ;;  %v794_v30 = vcvt.s32.f32 %v792_v29 }
 0x549   : > { %796 = vmin.xlane.f32.xlu0 %v795_v28 }
 0x5d2   : > { %v797_v32 = vpop.xlane.xlu0 %796 }
 0x5d3   : > { %vm798_vm5 = vcmp.eq.f32.partialorder %v795_v28, %v797_v32  ;;  %v803_v37 = vcvt.f32.s32 %v797_v32 }
 0x5d4   : > { %v799_v33 = vsel %vm798_vm5, %v794_v30, inf }
 0x5d5   : > { %800 = vmin.xlane.f32.xlu1 %v799_v33  ;;  %v804_v39 = vshll.u32 %v803_v37, 16 }
 0x65e   : > { %v801_v38 = vpop.xlane.xlu1 %800 }
 0x65f   : > { %v802_v40 = vcvt.f32.s32 %v801_v38 }
 0x661   : > { %v805_v41 = vadd.s32 %v804_v39, %v802_v40 }
 0x663   : > { %v806_v42 = vrot.slane %v805_v41, 4 }
 0x665   : > { %vm807_vm6 = vcmp.lt.s32.totalorder %v805_v41, %v806_v42 }
 0x666   : > { %v808_v11 = vsel %vm807_vm6, %v805_v41, %v806_v42 }
 0x667   : > { %v809_v43 = vrot.slane %v808_v11, 2 }
 0x669   : > { %vm810_vm7 = vcmp.lt.s32.totalorder %v808_v11, %v809_v43 }
 0x66a   : > { %v811_v8 = vsel %vm810_vm7, %v808_v11, %v809_v43 }
 0x66b   : > { %v812_v44 = vrot.slane %v811_v8, 1 }
 0x66d   : > { %vm813_vm8 = vcmp.lt.s32.totalorder %v811_v8, %v812_v44 }
 0x66e   : > { %v814_v12 = vsel %vm813_vm8, %v811_v8, %v812_v44 }
 0x66f   : > { %1064 = vpush %v814_v12 }
 0x6a0   : > { %s1065_s15 = spop %1064 }
 0x6a1   : > { %v820_v46 = vstv %s1065_s15 }
 0x6a2   : > { %v821_v47 = vsel %vm818_vm9, %v819_v45, %v820_v46 }
 0x6a3   : > { %vm822_vm11 = vcmp.eq.s32.totalorder %v817_v9, %v821_v47 }
 0x6a4   : > { %v1009_v48 = vsel %vm822_vm11, 1.0, %v1209_v36 }
 0x6a5   : > { %1056 = vmatmul.mubr.msk.f32.vlgmr.msra.gmra.mxu0 %vm825_vm10, %v1009_v48 }
 0x765   : > { %v895_v49 = vpop.f32.mrf.mxu0 }
 0x766   : > { %899 = vst [vmem:[%s1296_s19] sm:$0x3] %v895_v49 }
 0x767   : > { %v1057_v50 = vpop.f32.mrf.mxu0 }
 0x768 PF: > { %s18_s30 = sadd.s32 1, %s1204_s30   ;;  %s1505_s26 = smov %s1196_s28 }
 0x769   : > { %p15_p8 = scmp.ge.s32.totalorder %s18_s30, 10   ;;  %s1506_s27 = smov %s1200_s29 }
 0x76a   : > { %s1507_s28 = smov %s1510_s5  ;;  %s1508_s29 = smov %s1514_s8 }
 0x76b   :  { %17 = sbr.rel (!%p15_p8) target bundleno = 3 (0x3), region = 84 }

</bundles_post_ra>
